<compile_context>
chip_gen: v6e
topology: v6e:2x2x1
jax: 0.10.0
libtpu: 0.0.40
codegen_flags: <defaults>
</compile_context>

<pallas_src>
import functools

import jax
import jax.numpy as jnp
from jax.experimental import pallas as pl
from jax.experimental.pallas import tpu as pltpu


def _scale_kernel(emb_ref, out_ref, *, scale):
    # (tile_rows, row_elems) scaled copy; multiply in f32, single store.
    out_ref[...] = (emb_ref[...].astype(jnp.float32) * scale).astype(out_ref.dtype)


def _round_up(x: int, m: int) -> int:
    return (x + m - 1) // m * m


def _sublane_multiple(dtype) -> int:
    # Minimum second-to-last block dim: 8 (32-bit), 16 (bf16), 32 (8-bit).
    return 8 * (4 // jnp.dtype(dtype).itemsize)


def _pick_tile_rows(rows_needed: int, row_bytes_all_buffers: int, min_tile: int,
                    vmem_budget_bytes: int) -> int:
    # 4 live VMEM buffers (2x input, 2x output): keep their sum under budget.
    tile = (vmem_budget_bytes // row_bytes_all_buffers) // min_tile * min_tile
    tile = max(tile, min_tile)
    # Never over-read far past what the output needs.
    tile = min(tile, _round_up(rows_needed, min_tile))
    # If there is enough work, force grid >= 2 so the "parallel" axis splits
    # rows across v7x's two TensorCores (harmless extra step on v5e/v6e).
    if rows_needed >= 2 * min_tile:
        tile = min(tile, _round_up(pl.cdiv(rows_needed, 2), min_tile))
    return tile


def absolute_positional_embedding(emb_weight: jax.Array, seq_len: int, *,
                                  out_dtype=None,
                                  vmem_budget_bytes: int = 12 << 20):
    """Pallas TPU port of AbsolutePositionalEmbedding.forward.

    emb_weight: (max_seq_len, dim) embedding table (the nn.Embedding weight).
    seq_len:    x.shape[1] of the input activations.
    out_dtype:  output dtype (defaults to the table dtype; pass bf16 to halve
                HBM write traffic if the consumer accepts it).
    Returns:    (1, seq_len, dim) = emb_weight[:seq_len] * dim**-0.5
    """
    max_seq_len, dim = emb_weight.shape
    assert seq_len <= max_seq_len, "sequence longer than the positional table"
    scale = float(dim) ** -0.5
    out_dtype = emb_weight.dtype if out_dtype is None else jnp.dtype(out_dtype)

    in_item = jnp.dtype(emb_weight.dtype).itemsize
    out_item = jnp.dtype(out_dtype).itemsize
    min_tile = max(_sublane_multiple(emb_weight.dtype), _sublane_multiple(out_dtype))

    # Lane-dense view: if dim < a full 128-lane vreg row (or any non multiple
    # of 128), stores would be masked partial writes.  The op is elementwise,
    # so when the table flattens cleanly we retile it as (rows, 128).
    use_flat = (dim % 128 != 0
                and (max_seq_len * dim) % 128 == 0
                and (seq_len * dim) % 128 == 0)
    if use_flat:
        table = emb_weight.reshape(max_seq_len * dim // 128, 128)  # free reshape
        rows_out, row_elems = seq_len * dim // 128, 128
    else:
        table = emb_weight
        rows_out, row_elems = seq_len, dim

    row_bytes_all_buffers = 2 * row_elems * (in_item + out_item)
    tile_rows = _pick_tile_rows(rows_out, row_bytes_all_buffers, min_tile,
                                vmem_budget_bytes)
    grid = (pl.cdiv(rows_out, tile_rows),)

    out = pl.pallas_call(
        functools.partial(_scale_kernel, scale=scale),
        out_shape=jax.ShapeDtypeStruct((rows_out, row_elems), out_dtype),
        grid=grid,
        in_specs=[pl.BlockSpec((tile_rows, row_elems), lambda i: (i, 0))],
        out_specs=pl.BlockSpec((tile_rows, row_elems), lambda i: (i, 0)),
        compiler_params=pltpu.CompilerParams(
            dimension_semantics=("parallel",),
            vmem_limit_bytes=32 << 20,
        ),
    )(table)

    # 'n d -> () n d' (and un-flatten the lane-dense view): free reshape.
    return out.reshape(1, seq_len, dim)


if __name__ == "__main__":
    # Deterministic small example consistent with the module's forward:
    # AbsolutePositionalEmbedding(dim=32, max_seq_len=16) applied to x of
    # shape (batch=2, seq=8, dim=32).  Only x.shape[1] is consumed.
    key = jax.random.PRNGKey(0)
    wkey, xkey = jax.random.split(key)

    batch, seq_len, dim, max_seq_len = 2, 8, 32, 16
    emb_weight = jax.random.normal(wkey, (max_seq_len, dim), dtype=jnp.float32)
    x = jax.random.normal(xkey, (batch, seq_len, dim), dtype=jnp.float32)

    pos_emb = absolute_positional_embedding(emb_weight, x.shape[1])
    pos_emb = jax.block_until_ready(pos_emb)

    # Pure-JAX reference (same math as the PyTorch module).
    ref = (emb_weight[:seq_len] * (dim ** -0.5))[None]
    assert pos_emb.shape == (1, seq_len, dim)
    assert jnp.allclose(pos_emb, ref, atol=1e-6, rtol=1e-6)

    # Also exercise a shape that previously violated the (8,128) rule
    # (seq_len not a multiple of 8 and != max_seq_len) and a 128-multiple dim.
    emb2 = jax.random.normal(wkey, (512, 256), dtype=jnp.float32)
    out2 = jax.block_until_ready(absolute_positional_embedding(emb2, 100))
    ref2 = (emb2[:100] * (256 ** -0.5))[None]
    assert jnp.allclose(out2, ref2, atol=1e-6, rtol=1e-6)

    print("KERNEL_OK")
</pallas_src>

<mosaic_0001>
module attributes {stable_mosaic.version = 11 : i64} {
  func.func @_scale_kernel(%arg0: i32, %arg1: memref<8x128xf32, #tpu.memory_space<vmem>>, %arg2: memref<8x128xf32, #tpu.memory_space<vmem>>) attributes {dimension_semantics = [#tpu.dimension_semantics<parallel>], iteration_bounds = array<i64: 1>, scalar_prefetch = 0 : i64, scratch_operands = 0 : i64, tpu.core_type = #tpu.core_type<tc>, window_params = [{transform_indices = @transform_0, window_bounds = array<i64: 8, 128>}, {transform_indices = @transform_1, window_bounds = array<i64: 8, 128>}]} {
    %c0 = arith.constant 0 : index
    %c0_0 = arith.constant 0 : index
    %0 = vector.load %arg1[%c0, %c0_0] : memref<8x128xf32, #tpu.memory_space<vmem>>, vector<8x128xf32>
    %cst = arith.constant 0.176776692 : f32
    %1 = vector.broadcast %cst : f32 to vector<8x128xf32>
    %2 = arith.mulf %0, %1 : vector<8x128xf32>
    %c0_1 = arith.constant 0 : index
    %c0_2 = arith.constant 0 : index
    %3 = vector.load %arg2[%c0_1, %c0_2] : memref<8x128xf32, #tpu.memory_space<vmem>>, vector<8x128xf32>
    tpu.vector_store %arg2[%c0_1, %c0_2], %2 {strides = array<i32>} : memref<8x128xf32, #tpu.memory_space<vmem>>, vector<8x128xf32>,
    return
  }
  func.func @transform_0(%arg0: i32) -> (i32, i32) {
    %c0_i32 = arith.constant 0 : i32
    %c0_i32_0 = arith.constant 0 : i32
    return %arg0, %c0_i32 : i32, i32
  }
  func.func @transform_1(%arg0: i32) -> (i32, i32) {
    %c0_i32 = arith.constant 0 : i32
    %c0_i32_0 = arith.constant 0 : i32
    return %arg0, %c0_i32 : i32, i32
  }
}

</mosaic_0001>

<bundles_post_ra>
// kernel: tpu_custom_call.1
= control target key start
LH: loop header
LB: loop body
LE: loop exit
PB: predicated region body
PF: predicated region fallthrough
CT: control target
= control target key end

     0   :  { %6 = vsyncpa [#allocation3], 0  ;;  %s115_s0 = inlined_call_operand.hbm [shape: f32[4,128], index: 0, kind: input, shape index: {}]   ;;  %s116_s1 = inlined_call_operand.hbm [shape: f32[2,128], index: 1, kind: output, shape index: {}]  }
   0x1   :  { %7 = vsyncpa [#allocation4], 0 }
   0x2   :  { %12 = vsyncadd [#allocation3], 64  ;;  %s93_s6 = smov [#allocation2]  }
   0x3   :  { %s13_s7 = sshll.u32 %s93_s6, 4  ;;  %s14_s7 = int_to_ptr.vmem [resolvable:$true] %s13_s7 }
   0x4   :  { %s57_s8 = scalar_lea.vmem %s14_s7, 64  ;;  %s61_s9 = scalar_lea.vmem %s14_s7, 128 }
   0x5   :  { %p58_p0 = scmp.ne.s32.totalorder %s14_s7, %s57_s8  ;;  %p62_p1 = scmp.lt.s32.totalorder %s14_s7, %s14_s7 }
   0x6   :  { %p63_p2 = scmp.lt.s32.totalorder %s61_s9, %s57_s8 }
   0x8   :  { %p64_p3 = por %p63_p2, %p62_p1 }
   0xa   :  { %p65_p4 = pnand %p64_p3, %p58_p0 }
   0xc   :  { %68 = shalt.err (!%p65_p4)
}
   0xd   :  { %s94_s10 = smov 64   ;;  %s95_s11 = smov 4  }
   0xe   :  { %19 = dma.hbm_to_vmem [thread:$0]  %s115_s0, 64, %s14_s7, [#allocation3], %s94_s10, %s94_s10, %s95_s11  }
   0xf   :  { %89 = dma.done.wait [#allocation3], 128  }
  0x10   :  { %90 = vsyncadd [#allocation3], 4294967168  ;;  %v23_v0 = vld [vmem:[#allocation2] sm:$0xff] }
  0x11   :  { %v24_v1 = vmul.f32 0.17677669, %v23_v0 }
  0x13   :  { %25 = vst [vmem:[#allocation5] sm:$0xff] %v24_v1 }
  0x14   :  { %30 = vsyncadd [#allocation4], 96  ;;  %s96_s14 = smov [#allocation5]  }
  0x15   :  { %s31_s15 = sshll.u32 %s96_s14, 4  ;;  %s32_s15 = int_to_ptr.vmem [resolvable:$true] %s31_s15 }
  0x16   :  { %s69_s16 = scalar_lea.vmem %s32_s15, 32  ;;  %s73_s17 = scalar_lea.vmem %s32_s15, 128 }
  0x17   :  { %p70_p5 = scmp.ne.s32.totalorder %s32_s15, %s69_s16  ;;  %p74_p6 = scmp.lt.s32.totalorder %s32_s15, %s32_s15 }
  0x18   :  { %p75_p7 = scmp.lt.s32.totalorder %s73_s17, %s69_s16 }
  0x1a   :  { %p76_p8 = por %p75_p7, %p74_p6 }
  0x1c   :  { %p77_p9 = pnand %p76_p8, %p70_p5 }
  0x1e   :  { %80 = shalt.err (!%p77_p9)
}
  0x1f   :  { %s97_s18 = smov 32   ;;  %s98_s19 = smov 2  }
  0x20   :  { %37 = dma.vmem_to_hbm [thread:$0]  %s32_s15, 32, %s116_s1, [#allocation4], %s97_s18, %s97_s18, %s98_s19  }
  0x21   :  { %91 = dma.done.wait [#allocation4], 128  }
  0x22   :  { %92 = vsyncadd [#allocation4], 4294967168 }
  0x23   :  { %41 = vsyncpa [#allocation3], 1 }
  0x24   :  { %42 = vsyncpa [#allocation4], 1 }

</bundles_post_ra>
